<compile_context>
chip_gen: v5e
topology: v5e:2x2
jax: 0.10.0
libtpu: 0.0.40
codegen_flags: <defaults>
</compile_context>

<pallas_src>
import math

import jax
import jax.numpy as jnp
import numpy as np
from jax import lax
from jax.experimental import pallas as pl
from jax.experimental.pallas import tpu as pltpu

# ---- small synthetic config (GPT-style) --------------------------------------
B = 2              # batch
T = 8              # sequence length
C = 32             # n_embd
N_HEAD = 4
HEAD_DIM = C // N_HEAD
G = B * N_HEAD     # merged (batch, head) axis used inside the kernel
CP = 128           # lane-padded output width (multiple of 128 lanes)
LN_EPS = 1e-5
NEG_INF = -1e30    # finite "minus infinity" (robust: no inf-inf NaN risk)


# ---- in-kernel helpers --------------------------------------------------------
def _layernorm(h, g, b):
    mu = jnp.mean(h, axis=-1, keepdims=True)
    var = jnp.mean((h - mu) ** 2, axis=-1, keepdims=True)
    return (h - mu) * lax.rsqrt(var + LN_EPS) * g + b


def _gelu_tanh(x):
    # PyTorch nn.GELU(approximate='tanh')
    c = math.sqrt(2.0 / math.pi)
    return 0.5 * x * (1.0 + jnp.tanh(c * (x + 0.044715 * x * x * x)))


def _tile_over_batch(a):
    # (H, ...) -> (B*H, ...): replicate per-head params along the merged batch axis.
    return jnp.broadcast_to(a[None], (B,) + a.shape).reshape(
        (B * a.shape[0],) + a.shape[1:])


# ---- the fused Block kernel ----------------------------------------------------
def block_kernel(x_ref,
                 ln1_g_ref, ln1_b_ref,
                 wq_ref, bq_ref, wk_ref, bk_ref, wv_ref, bv_ref,
                 wo_ref, bo_ref,
                 ln2_g_ref, ln2_b_ref,
                 w_fc_ref, b_fc_ref,
                 w_proj_ref, b_proj_ref,
                 out_ref):
    x3 = x_ref[...]                                            # (B, T, C)

    # ---------------- attention branch: x + proj(attn(ln_1(x))) ----------------
    h3 = _layernorm(x3, ln1_g_ref[...], ln1_b_ref[...])        # (B, T, C)

    # heads live on a leading batch axis (g = b*N_HEAD + h): no lane slicing.
    h_g = jnp.broadcast_to(h3[:, None], (B, N_HEAD, T, C)).reshape(G, T, C)
    wq = _tile_over_batch(wq_ref[...]); bq = _tile_over_batch(bq_ref[...])
    wk = _tile_over_batch(wk_ref[...]); bk = _tile_over_batch(bk_ref[...])
    wv = _tile_over_batch(wv_ref[...]); bv = _tile_over_batch(bv_ref[...])
    wo = _tile_over_batch(wo_ref[...])

    q = jnp.einsum("gtc,gcd->gtd", h_g, wq,
                   preferred_element_type=jnp.float32) + bq    # (G, T, D) (pre-scaled)
    k = jnp.einsum("gtc,gcd->gtd", h_g, wk,
                   preferred_element_type=jnp.float32) + bk
    v = jnp.einsum("gtc,gcd->gtd", h_g, wv,
                   preferred_element_type=jnp.float32) + bv

    # causal softmax(QK^T) -- 1/sqrt(HEAD_DIM) already folded into wq/bq.
    att = jnp.einsum("gtd,gsd->gts", q, k,
                     preferred_element_type=jnp.float32)       # (G, T, T)
    row = lax.broadcasted_iota(jnp.int32, (G, T, T), 1)
    col = lax.broadcasted_iota(jnp.int32, (G, T, T), 2)
    att = jnp.where(col <= row, att, NEG_INF)
    att = att - jnp.max(att, axis=-1, keepdims=True)
    p = jnp.exp(att)
    denom = jnp.sum(p, axis=-1, keepdims=True)
    p = p * pl.reciprocal(denom, approx=True)                  # EUP reciprocal

    ctx = jnp.einsum("gts,gsd->gtd", p, v,
                     preferred_element_type=jnp.float32)       # (G, T, D)

    # fused output projection: per-head (T,D)@(D,C), reduced over heads
    # (replaces concatenate(head_outs) + big matmul).
    proj = jnp.einsum("gtd,gdc->gtc", ctx, wo,
                      preferred_element_type=jnp.float32)      # (G, T, C)
    y3 = jnp.sum(proj.reshape(B, N_HEAD, T, C), axis=1) + bo_ref[...]   # (B, T, C)

    x1 = (x3 + y3).reshape(B * T, C)                           # residual 1, flattened

    # ---------------- MLP branch: x1 + mlp(ln_2(x1)) ----------------------------
    h2 = _layernorm(x1, ln2_g_ref[...], ln2_b_ref[...])        # (B*T, C)
    f = jnp.dot(h2, w_fc_ref[...],
                preferred_element_type=jnp.float32) + b_fc_ref[...]     # (B*T, 4C)
    f = _gelu_tanh(f)
    f = jnp.dot(f, w_proj_ref[...],
                preferred_element_type=jnp.float32) + b_proj_ref[...]   # (B*T, CP)

    # lane-dense store: last dim is CP = 128 (pad the residual out to CP lanes).
    x1_p = jnp.concatenate(
        [x1, jnp.zeros((B * T, CP - C), jnp.float32)], axis=-1)
    out_ref[...] = x1_p + f                                    # residual 2


# ---- one-time host-side parameter preparation -----------------------------------
def prepare_params(p):
    """Re-layout params for the kernel:
       * heads on a leading axis for Q/K/V and the attention projection,
       * 1/sqrt(HEAD_DIM) folded into the Q weight/bias,
       * MLP down-projection zero-padded to CP=128 output lanes."""
    scale = 1.0 / math.sqrt(HEAD_DIM)
    w_qkv = p["w_qkv"]                     # (C, 3C)
    b_qkv = p["b_qkv"].reshape(3 * C)      # (3C,)

    def w_heads(w):                        # (C, C) -> (H, C, D)
        return jnp.transpose(w.reshape(C, N_HEAD, HEAD_DIM), (1, 0, 2))

    def b_heads(b):                        # (C,) -> (H, 1, D)
        return b.reshape(N_HEAD, 1, HEAD_DIM)

    w_q = w_heads(w_qkv[:, 0:C]) * scale
    w_k = w_heads(w_qkv[:, C:2 * C])
    w_v = w_heads(w_qkv[:, 2 * C:3 * C])
    b_q = b_heads(b_qkv[0:C]) * scale
    b_k = b_heads(b_qkv[C:2 * C])
    b_v = b_heads(b_qkv[2 * C:3 * C])

    w_o = p["w_attnproj"].reshape(N_HEAD, HEAD_DIM, C)        # (H, D, C)

    w_proj_p = jnp.zeros((4 * C, CP), jnp.float32).at[:, :C].set(p["w_proj"])
    b_proj_p = jnp.zeros((1, CP), jnp.float32).at[:, :C].set(p["b_proj"])

    return [
        p["ln1_g"], p["ln1_b"],
        w_q, b_q, w_k, b_k, w_v, b_v,
        w_o, p["b_attnproj"],
        p["ln2_g"], p["ln2_b"],
        p["w_fc"], p["b_fc"],
        w_proj_p, b_proj_p,
    ]


# ---- wrapper --------------------------------------------------------------------
def block_forward(x, prepared):
    vmem = pl.BlockSpec(memory_space=pltpu.MemorySpace.VMEM)
    out_p = pl.pallas_call(
        block_kernel,
        out_shape=jax.ShapeDtypeStruct((B * T, CP), jnp.float32),
        in_specs=[vmem] * (1 + len(prepared)),
        out_specs=vmem,
    )(x, *prepared)
    # drop the lane padding and restore (B, T, C): pure layout plumbing.
    return out_p[:, :C].reshape(B, T, C)


# ---- pure-JAX reference (mirrors the PyTorch forward, uses the RAW params) -------
def block_reference(x, p):
    def ln(h, g, b):
        mu = jnp.mean(h, axis=-1, keepdims=True)
        var = jnp.mean((h - mu) ** 2, axis=-1, keepdims=True)
        return (h - mu) / jnp.sqrt(var + LN_EPS) * g + b

    h = ln(x, p["ln1_g"], p["ln1_b"])
    qkv = h @ p["w_qkv"] + p["b_qkv"]
    q, k, v = jnp.split(qkv, 3, axis=-1)
    q = q.reshape(B, T, N_HEAD, HEAD_DIM).transpose(0, 2, 1, 3)
    k = k.reshape(B, T, N_HEAD, HEAD_DIM).transpose(0, 2, 1, 3)
    v = v.reshape(B, T, N_HEAD, HEAD_DIM).transpose(0, 2, 1, 3)
    att = jnp.einsum("bhtd,bhsd->bhts", q, k) / math.sqrt(HEAD_DIM)
    causal = jnp.tril(jnp.ones((T, T), bool))
    att = jnp.where(causal, att, -jnp.inf)
    att = jax.nn.softmax(att, axis=-1)
    y = jnp.einsum("bhts,bhsd->bhtd", att, v)
    y = y.transpose(0, 2, 1, 3).reshape(B, T, C)
    y = y @ p["w_attnproj"] + p["b_attnproj"]
    x1 = x + y

    h2 = ln(x1, p["ln2_g"], p["ln2_b"])
    f = h2 @ p["w_fc"] + p["b_fc"]
    c = math.sqrt(2.0 / math.pi)
    f = 0.5 * f * (1.0 + jnp.tanh(c * (f + 0.044715 * f ** 3)))
    f = f @ p["w_proj"] + p["b_proj"]
    return x1 + f


# ---- main -------------------------------------------------------------------------
if __name__ == "__main__":
    key = jax.random.PRNGKey(0)
    keys = jax.random.split(key, 12)

    params = {
        # LayerNorms (weight ~1, bias ~0, slightly perturbed for coverage)
        "ln1_g": (1.0 + 0.02 * jax.random.normal(keys[0], (1, C))).astype(jnp.float32),
        "ln1_b": (0.01 * jax.random.normal(keys[1], (1, C))).astype(jnp.float32),
        "ln2_g": (1.0 + 0.02 * jax.random.normal(keys[2], (1, C))).astype(jnp.float32),
        "ln2_b": (0.01 * jax.random.normal(keys[3], (1, C))).astype(jnp.float32),
        # attention: c_attn (C -> 3C), c_proj (C -> C)
        "w_qkv": (0.02 * jax.random.normal(keys[4], (C, 3 * C))).astype(jnp.float32),
        "b_qkv": (0.01 * jax.random.normal(keys[5], (1, 3 * C))).astype(jnp.float32),
        "w_attnproj": (0.02 * jax.random.normal(keys[6], (C, C))).astype(jnp.float32),
        "b_attnproj": (0.01 * jax.random.normal(keys[7], (1, C))).astype(jnp.float32),
        # MLP: c_fc (C -> 4C), c_proj (4C -> C)
        "w_fc": (0.02 * jax.random.normal(keys[8], (C, 4 * C))).astype(jnp.float32),
        "b_fc": (0.01 * jax.random.normal(keys[9], (1, 4 * C))).astype(jnp.float32),
        "w_proj": (0.02 * jax.random.normal(keys[10], (4 * C, C))).astype(jnp.float32),
        "b_proj": (0.01 * jax.random.normal(keys[11], (1, C))).astype(jnp.float32),
    }

    x = jax.random.normal(jax.random.PRNGKey(42), (B, T, C), jnp.float32)

    prepared = prepare_params(params)           # one-time host-side re-layout
    out = block_forward(x, prepared)
    out = jax.block_until_ready(out)

    ref = block_reference(x, params)
    # tolerance relaxed vs 1e-4 only to cover the EUP approximate reciprocal in the
    # softmax denominator (expected error << 1e-3 at these magnitudes).
    np.testing.assert_allclose(np.asarray(out), np.asarray(ref), rtol=2e-3, atol=2e-3)

    print("KERNEL_OK")
</pallas_src>

<mosaic_0001>
module attributes {stable_mosaic.version = 11 : i64} {
  func.func @block_kernel(%arg0: memref<2x8x32xf32, #tpu.memory_space<vmem>>, %arg1: memref<1x32xf32, #tpu.memory_space<vmem>>, %arg2: memref<1x32xf32, #tpu.memory_space<vmem>>, %arg3: memref<4x32x8xf32, #tpu.memory_space<vmem>>, %arg4: memref<4x1x8xf32, #tpu.memory_space<vmem>>, %arg5: memref<4x32x8xf32, #tpu.memory_space<vmem>>, %arg6: memref<4x1x8xf32, #tpu.memory_space<vmem>>, %arg7: memref<4x32x8xf32, #tpu.memory_space<vmem>>, %arg8: memref<4x1x8xf32, #tpu.memory_space<vmem>>, %arg9: memref<4x8x32xf32, #tpu.memory_space<vmem>>, %arg10: memref<1x32xf32, #tpu.memory_space<vmem>>, %arg11: memref<1x32xf32, #tpu.memory_space<vmem>>, %arg12: memref<1x32xf32, #tpu.memory_space<vmem>>, %arg13: memref<32x128xf32, #tpu.memory_space<vmem>>, %arg14: memref<1x128xf32, #tpu.memory_space<vmem>>, %arg15: memref<128x128xf32, #tpu.memory_space<vmem>>, %arg16: memref<1x128xf32, #tpu.memory_space<vmem>>, %arg17: memref<16x128xf32, #tpu.memory_space<vmem>>) attributes {dimension_semantics = [], scalar_prefetch = 0 : i64, scratch_operands = 0 : i64, tpu.core_type = #tpu.core_type<tc>} {
    %c0 = arith.constant 0 : index
    %c0_0 = arith.constant 0 : index
    %c0_1 = arith.constant 0 : index
    %0 = vector.load %arg0[%c0, %c0_0, %c0_1] : memref<2x8x32xf32, #tpu.memory_space<vmem>>, vector<2x8x32xf32>
    %c0_2 = arith.constant 0 : index
    %c0_3 = arith.constant 0 : index
    %1 = vector.load %arg1[%c0_2, %c0_3] : memref<1x32xf32, #tpu.memory_space<vmem>>, vector<1x32xf32>
    %c0_4 = arith.constant 0 : index
    %c0_5 = arith.constant 0 : index
    %2 = vector.load %arg2[%c0_4, %c0_5] : memref<1x32xf32, #tpu.memory_space<vmem>>, vector<1x32xf32>
    %cst = arith.constant dense<0.000000e+00> : vector<2x8xf32>
    %3 = vector.multi_reduction <add>, %0, %cst [2] : vector<2x8x32xf32> to vector<2x8xf32>
    %4 = vector.shape_cast %3 : vector<2x8xf32> to vector<2x8x1xf32>
    %cst_6 = arith.constant 3.200000e+01 : f32
    %5 = vector.broadcast %cst_6 : f32 to vector<2x8x1xf32>
    %6 = arith.divf %4, %5 : vector<2x8x1xf32>
    %7 = vector.broadcast %6 : vector<2x8x1xf32> to vector<2x8x32xf32>
    %8 = arith.subf %0, %7 : vector<2x8x32xf32>
    %9 = arith.mulf %8, %8 : vector<2x8x32xf32>
    %cst_7 = arith.constant dense<0.000000e+00> : vector<2x8xf32>
    %10 = vector.multi_reduction <add>, %9, %cst_7 [2] : vector<2x8x32xf32> to vector<2x8xf32>
    %11 = vector.shape_cast %10 : vector<2x8xf32> to vector<2x8x1xf32>
    %cst_8 = arith.constant 3.200000e+01 : f32
    %12 = vector.broadcast %cst_8 : f32 to vector<2x8x1xf32>
    %13 = arith.divf %11, %12 : vector<2x8x1xf32>
    %14 = vector.broadcast %6 : vector<2x8x1xf32> to vector<2x8x32xf32>
    %15 = arith.subf %0, %14 : vector<2x8x32xf32>
    %cst_9 = arith.constant 9.99999974E-6 : f32
    %16 = vector.broadcast %cst_9 : f32 to vector<2x8x1xf32>
    %17 = arith.addf %13, %16 : vector<2x8x1xf32>
    %18 = math.rsqrt %17 : vector<2x8x1xf32>
    %19 = vector.broadcast %18 : vector<2x8x1xf32> to vector<2x8x32xf32>
    %20 = arith.mulf %15, %19 : vector<2x8x32xf32>
    %21 = vector.shape_cast %1 : vector<1x32xf32> to vector<1x1x32xf32>
    %22 = vector.broadcast %21 : vector<1x1x32xf32> to vector<2x8x32xf32>
    %23 = arith.mulf %20, %22 : vector<2x8x32xf32>
    %24 = vector.shape_cast %2 : vector<1x32xf32> to vector<1x1x32xf32>
    %25 = vector.broadcast %24 : vector<1x1x32xf32> to vector<2x8x32xf32>
    %26 = arith.addf %23, %25 : vector<2x8x32xf32>
    %27 = vector.shape_cast %26 : vector<2x8x32xf32> to vector<2x1x8x32xf32>
    %28 = vector.shape_cast %27 : vector<2x1x8x32xf32> to vector<2x1x8x32xf32>
    %29 = vector.broadcast %28 : vector<2x1x8x32xf32> to vector<2x4x8x32xf32>
    %30 = vector.shape_cast %29 : vector<2x4x8x32xf32> to vector<8x8x32xf32>
    %c0_10 = arith.constant 0 : index
    %c0_11 = arith.constant 0 : index
    %c0_12 = arith.constant 0 : index
    %31 = vector.load %arg3[%c0_10, %c0_11, %c0_12] : memref<4x32x8xf32, #tpu.memory_space<vmem>>, vector<4x32x8xf32>
    %32 = vector.shape_cast %31 : vector<4x32x8xf32> to vector<1x4x32x8xf32>
    %33 = vector.shape_cast %32 : vector<1x4x32x8xf32> to vector<1x4x32x8xf32>
    %34 = vector.broadcast %33 : vector<1x4x32x8xf32> to vector<2x4x32x8xf32>
    %35 = vector.shape_cast %34 : vector<2x4x32x8xf32> to vector<8x32x8xf32>
    %c0_13 = arith.constant 0 : index
    %c0_14 = arith.constant 0 : index
    %c0_15 = arith.constant 0 : index
    %36 = vector.load %arg4[%c0_13, %c0_14, %c0_15] : memref<4x1x8xf32, #tpu.memory_space<vmem>>, vector<4x1x8xf32>
    %37 = vector.shape_cast %36 : vector<4x1x8xf32> to vector<1x4x1x8xf32>
    %38 = vector.shape_cast %37 : vector<1x4x1x8xf32> to vector<1x4x1x8xf32>
    %39 = vector.broadcast %38 : vector<1x4x1x8xf32> to vector<2x4x1x8xf32>
    %40 = vector.shape_cast %39 : vector<2x4x1x8xf32> to vector<8x1x8xf32>
    %c0_16 = arith.constant 0 : index
    %c0_17 = arith.constant 0 : index
    %c0_18 = arith.constant 0 : index
    %41 = vector.load %arg5[%c0_16, %c0_17, %c0_18] : memref<4x32x8xf32, #tpu.memory_space<vmem>>, vector<4x32x8xf32>
    %42 = vector.shape_cast %41 : vector<4x32x8xf32> to vector<1x4x32x8xf32>
    %43 = vector.shape_cast %42 : vector<1x4x32x8xf32> to vector<1x4x32x8xf32>
    %44 = vector.broadcast %43 : vector<1x4x32x8xf32> to vector<2x4x32x8xf32>
    %45 = vector.shape_cast %44 : vector<2x4x32x8xf32> to vector<8x32x8xf32>
    %c0_19 = arith.constant 0 : index
    %c0_20 = arith.constant 0 : index
    %c0_21 = arith.constant 0 : index
    %46 = vector.load %arg6[%c0_19, %c0_20, %c0_21] : memref<4x1x8xf32, #tpu.memory_space<vmem>>, vector<4x1x8xf32>
    %47 = vector.shape_cast %46 : vector<4x1x8xf32> to vector<1x4x1x8xf32>
    %48 = vector.shape_cast %47 : vector<1x4x1x8xf32> to vector<1x4x1x8xf32>
    %49 = vector.broadcast %48 : vector<1x4x1x8xf32> to vector<2x4x1x8xf32>
    %50 = vector.shape_cast %49 : vector<2x4x1x8xf32> to vector<8x1x8xf32>
    %c0_22 = arith.constant 0 : index
    %c0_23 = arith.constant 0 : index
    %c0_24 = arith.constant 0 : index
    %51 = vector.load %arg7[%c0_22, %c0_23, %c0_24] : memref<4x32x8xf32, #tpu.memory_space<vmem>>, vector<4x32x8xf32>
    %52 = vector.shape_cast %51 : vector<4x32x8xf32> to vector<1x4x32x8xf32>
    %53 = vector.shape_cast %52 : vector<1x4x32x8xf32> to vector<1x4x32x8xf32>
    %54 = vector.broadcast %53 : vector<1x4x32x8xf32> to vector<2x4x32x8xf32>
    %55 = vector.shape_cast %54 : vector<2x4x32x8xf32> to vector<8x32x8xf32>
    %c0_25 = arith.constant 0 : index
    %c0_26 = arith.constant 0 : index
    %c0_27 = arith.constant 0 : index
    %56 = vector.load %arg8[%c0_25, %c0_26, %c0_27] : memref<4x1x8xf32, #tpu.memory_space<vmem>>, vector<4x1x8xf32>
    %57 = vector.shape_cast %56 : vector<4x1x8xf32> to vector<1x4x1x8xf32>
    %58 = vector.shape_cast %57 : vector<1x4x1x8xf32> to vector<1x4x1x8xf32>
    %59 = vector.broadcast %58 : vector<1x4x1x8xf32> to vector<2x4x1x8xf32>
    %60 = vector.shape_cast %59 : vector<2x4x1x8xf32> to vector<8x1x8xf32>
    %c0_28 = arith.constant 0 : index
    %c0_29 = arith.constant 0 : index
    %c0_30 = arith.constant 0 : index
    %61 = vector.load %arg9[%c0_28, %c0_29, %c0_30] : memref<4x8x32xf32, #tpu.memory_space<vmem>>, vector<4x8x32xf32>
    %62 = vector.shape_cast %61 : vector<4x8x32xf32> to vector<1x4x8x32xf32>
    %63 = vector.shape_cast %62 : vector<1x4x8x32xf32> to vector<1x4x8x32xf32>
    %64 = vector.broadcast %63 : vector<1x4x8x32xf32> to vector<2x4x8x32xf32>
    %65 = vector.shape_cast %64 : vector<2x4x8x32xf32> to vector<8x8x32xf32>
    "tpu.trace_start"() <{level = 10 : i32, message = "gtc,gcd->gtd"}> : () -> ()
    %cst_31 = arith.constant dense<0.000000e+00> : vector<8x8x8xf32>
    %66 = tpu.matmul %30, %35, %cst_31 {dimension_numbers = #tpu.dot_dimension_numbers<[2], [1], [1], [2], [0, 0, 0, 1, 1, 2], [0], [0]>} : vector<8x8x32xf32>, vector<8x32x8xf32>, vector<8x8x8xf32> -> vector<8x8x8xf32>
    "tpu.trace_stop"() : () -> ()
    %67 = vector.broadcast %40 : vector<8x1x8xf32> to vector<8x8x8xf32>
    %68 = arith.addf %66, %67 : vector<8x8x8xf32>
    "tpu.trace_start"() <{level = 10 : i32, message = "gtc,gcd->gtd"}> : () -> ()
    %cst_32 = arith.constant dense<0.000000e+00> : vector<8x8x8xf32>
    %69 = tpu.matmul %30, %45, %cst_32 {dimension_numbers = #tpu.dot_dimension_numbers<[2], [1], [1], [2], [0, 0, 0, 1, 1, 2], [0], [0]>} : vector<8x8x32xf32>, vector<8x32x8xf32>, vector<8x8x8xf32> -> vector<8x8x8xf32>
    "tpu.trace_stop"() : () -> ()
    %70 = vector.broadcast %50 : vector<8x1x8xf32> to vector<8x8x8xf32>
    %71 = arith.addf %69, %70 : vector<8x8x8xf32>
    "tpu.trace_start"() <{level = 10 : i32, message = "gtc,gcd->gtd"}> : () -> ()
    %cst_33 = arith.constant dense<0.000000e+00> : vector<8x8x8xf32>
    %72 = tpu.matmul %30, %55, %cst_33 {dimension_numbers = #tpu.dot_dimension_numbers<[2], [1], [1], [2], [0, 0, 0, 1, 1, 2], [0], [0]>} : vector<8x8x32xf32>, vector<8x32x8xf32>, vector<8x8x8xf32> -> vector<8x8x8xf32>
    "tpu.trace_stop"() : () -> ()
    %73 = vector.broadcast %60 : vector<8x1x8xf32> to vector<8x8x8xf32>
    %74 = arith.addf %72, %73 : vector<8x8x8xf32>
    "tpu.trace_start"() <{level = 10 : i32, message = "gtd,gsd->gts"}> : () -> ()
    %cst_34 = arith.constant dense<0.000000e+00> : vector<8x8x8xf32>
    %75 = tpu.matmul %68, %71, %cst_34 {dimension_numbers = #tpu.dot_dimension_numbers<[2], [2], [1], [1], [0, 0, 0, 1, 1, 1], [0], [0]>} : vector<8x8x8xf32>, vector<8x8x8xf32>, vector<8x8x8xf32> -> vector<8x8x8xf32>
    "tpu.trace_stop"() : () -> ()
    %76 = tpu.iota {dimensions = array<i32: 1>} : vector<8x8x8xi32>
    %77 = tpu.iota {dimensions = array<i32: 2>} : vector<8x8x8xi32>
    %78 = arith.cmpi sle, %77, %76 : vector<8x8x8xi32>
    %cst_35 = arith.constant -1.000000e+30 : f32
    %79 = vector.broadcast %cst_35 : f32 to vector<8x8x8xf32>
    %80 = arith.select %78, %75, %79 : vector<8x8x8xi1>, vector<8x8x8xf32>
    %cst_36 = arith.constant dense<0xFF800000> : vector<8x8xf32>
    %81 = vector.multi_reduction <maximumf>, %80, %cst_36 [2] : vector<8x8x8xf32> to vector<8x8xf32>
    %82 = vector.shape_cast %81 : vector<8x8xf32> to vector<8x8x1xf32>
    %83 = vector.broadcast %82 : vector<8x8x1xf32> to vector<8x8x8xf32>
    %84 = arith.subf %80, %83 : vector<8x8x8xf32>
    %85 = math.exp %84 : vector<8x8x8xf32>
    %cst_37 = arith.constant dense<0.000000e+00> : vector<8x8xf32>
    %86 = vector.multi_reduction <add>, %85, %cst_37 [2] : vector<8x8x8xf32> to vector<8x8xf32>
    %87 = vector.shape_cast %86 : vector<8x8xf32> to vector<8x8x1xf32>
    %88 = tpu.reciprocal %87 {approx = true} : vector<8x8x1xf32> -> vector<8x8x1xf32>
    %89 = vector.broadcast %88 : vector<8x8x1xf32> to vector<8x8x8xf32>
    %90 = arith.mulf %85, %89 : vector<8x8x8xf32>
    "tpu.trace_start"() <{level = 10 : i32, message = "gts,gsd->gtd"}> : () -> ()
    %cst_38 = arith.constant dense<0.000000e+00> : vector<8x8x8xf32>
    %91 = tpu.matmul %90, %74, %cst_38 {dimension_numbers = #tpu.dot_dimension_numbers<[2], [1], [1], [2], [0, 0, 0, 1, 1, 2], [0], [0]>} : vector<8x8x8xf32>, vector<8x8x8xf32>, vector<8x8x8xf32> -> vector<8x8x8xf32>
    "tpu.trace_stop"() : () -> ()
    "tpu.trace_start"() <{level = 10 : i32, message = "gtd,gdc->gtc"}> : () -> ()
    %cst_39 = arith.constant dense<0.000000e+00> : vector<8x8x32xf32>
    %92 = tpu.matmul %91, %65, %cst_39 {dimension_numbers = #tpu.dot_dimension_numbers<[2], [1], [1], [2], [0, 0, 0, 1, 1, 2], [0], [0]>} : vector<8x8x8xf32>, vector<8x8x32xf32>, vector<8x8x32xf32> -> vector<8x8x32xf32>
    "tpu.trace_stop"() : () -> ()
    %93 = vector.shape_cast %92 : vector<8x8x32xf32> to vector<2x4x8x32xf32>
    %cst_40 = arith.constant dense<0.000000e+00> : vector<2x8x32xf32>
    %94 = vector.multi_reduction <add>, %93, %cst_40 [1] : vector<2x4x8x32xf32> to vector<2x8x32xf32>
    %c0_41 = arith.constant 0 : index
    %c0_42 = arith.constant 0 : index
    %95 = vector.load %arg10[%c0_41, %c0_42] : memref<1x32xf32, #tpu.memory_space<vmem>>, vector<1x32xf32>
    %96 = vector.shape_cast %95 : vector<1x32xf32> to vector<1x1x32xf32>
    %97 = vector.broadcast %96 : vector<1x1x32xf32> to vector<2x8x32xf32>
    %98 = arith.addf %94, %97 : vector<2x8x32xf32>
    %99 = arith.addf %0, %98 : vector<2x8x32xf32>
    %100 = vector.shape_cast %99 : vector<2x8x32xf32> to vector<16x32xf32>
    %c0_43 = arith.constant 0 : index
    %c0_44 = arith.constant 0 : index
    %101 = vector.load %arg11[%c0_43, %c0_44] : memref<1x32xf32, #tpu.memory_space<vmem>>, vector<1x32xf32>
    %c0_45 = arith.constant 0 : index
    %c0_46 = arith.constant 0 : index
    %102 = vector.load %arg12[%c0_45, %c0_46] : memref<1x32xf32, #tpu.memory_space<vmem>>, vector<1x32xf32>
    %cst_47 = arith.constant dense<0.000000e+00> : vector<16xf32>
    %103 = vector.multi_reduction <add>, %100, %cst_47 [1] : vector<16x32xf32> to vector<16xf32>
    %104 = vector.shape_cast %103 : vector<16xf32> to vector<16x1xf32>
    %cst_48 = arith.constant 3.200000e+01 : f32
    %105 = vector.broadcast %cst_48 : f32 to vector<16x1xf32>
    %106 = arith.divf %104, %105 : vector<16x1xf32>
    %107 = vector.broadcast %106 : vector<16x1xf32> to vector<16x32xf32>
    %108 = arith.subf %100, %107 : vector<16x32xf32>
    %109 = arith.mulf %108, %108 : vector<16x32xf32>
    %cst_49 = arith.constant dense<0.000000e+00> : vector<16xf32>
    %110 = vector.multi_reduction <add>, %109, %cst_49 [1] : vector<16x32xf32> to vector<16xf32>
    %111 = vector.shape_cast %110 : vector<16xf32> to vector<16x1xf32>
    %cst_50 = arith.constant 3.200000e+01 : f32
    %112 = vector.broadcast %cst_50 : f32 to vector<16x1xf32>
    %113 = arith.divf %111, %112 : vector<16x1xf32>
    %114 = vector.broadcast %106 : vector<16x1xf32> to vector<16x32xf32>
    %115 = arith.subf %100, %114 : vector<16x32xf32>
    %cst_51 = arith.constant 9.99999974E-6 : f32
    %116 = vector.broadcast %cst_51 : f32 to vector<16x1xf32>
    %117 = arith.addf %113, %116 : vector<16x1xf32>
    %118 = math.rsqrt %117 : vector<16x1xf32>
    %119 = vector.broadcast %118 : vector<16x1xf32> to vector<16x32xf32>
    %120 = arith.mulf %115, %119 : vector<16x32xf32>
    %121 = vector.broadcast %101 : vector<1x32xf32> to vector<16x32xf32>
    %122 = arith.mulf %120, %121 : vector<16x32xf32>
    %123 = vector.broadcast %102 : vector<1x32xf32> to vector<16x32xf32>
    %124 = arith.addf %122, %123 : vector<16x32xf32>
    %c0_52 = arith.constant 0 : index
    %c0_53 = arith.constant 0 : index
    %125 = vector.load %arg13[%c0_52, %c0_53] : memref<32x128xf32, #tpu.memory_space<vmem>>, vector<32x128xf32>
    %cst_54 = arith.constant dense<0.000000e+00> : vector<16x128xf32>
    %126 = tpu.matmul %124, %125, %cst_54 {dimension_numbers = #tpu.dot_dimension_numbers<[1], [0], [0], [1], [0, 0, 1, 1], [], []>} : vector<16x32xf32>, vector<32x128xf32>, vector<16x128xf32> -> vector<16x128xf32>
    %c0_55 = arith.constant 0 : index
    %c0_56 = arith.constant 0 : index
    %127 = vector.load %arg14[%c0_55, %c0_56] : memref<1x128xf32, #tpu.memory_space<vmem>>, vector<1x128xf32>
    %128 = vector.broadcast %127 : vector<1x128xf32> to vector<16x128xf32>
    %129 = arith.addf %126, %128 : vector<16x128xf32>
    %cst_57 = arith.constant 5.000000e-01 : f32
    %130 = vector.broadcast %cst_57 : f32 to vector<16x128xf32>
    %131 = arith.mulf %130, %129 : vector<16x128xf32>
    %cst_58 = arith.constant 4.471500e-02 : f32
    %132 = vector.broadcast %cst_58 : f32 to vector<16x128xf32>
    %133 = arith.mulf %132, %129 : vector<16x128xf32>
    %134 = arith.mulf %133, %129 : vector<16x128xf32>
    %135 = arith.mulf %134, %129 : vector<16x128xf32>
    %136 = arith.addf %129, %135 : vector<16x128xf32>
    %cst_59 = arith.constant 0.797884583 : f32
    %137 = vector.broadcast %cst_59 : f32 to vector<16x128xf32>
    %138 = arith.mulf %137, %136 : vector<16x128xf32>
    %139 = math.tanh %138 : vector<16x128xf32>
    %cst_60 = arith.constant 1.000000e+00 : f32
    %140 = vector.broadcast %cst_60 : f32 to vector<16x128xf32>
    %141 = arith.addf %140, %139 : vector<16x128xf32>
    %142 = arith.mulf %131, %141 : vector<16x128xf32>
    %c0_61 = arith.constant 0 : index
    %c0_62 = arith.constant 0 : index
    %143 = vector.load %arg15[%c0_61, %c0_62] : memref<128x128xf32, #tpu.memory_space<vmem>>, vector<128x128xf32>
    %cst_63 = arith.constant dense<0.000000e+00> : vector<16x128xf32>
    %144 = tpu.matmul %142, %143, %cst_63 {dimension_numbers = #tpu.dot_dimension_numbers<[1], [0], [0], [1], [0, 0, 1, 1], [], []>} : vector<16x128xf32>, vector<128x128xf32>, vector<16x128xf32> -> vector<16x128xf32>
    %c0_64 = arith.constant 0 : index
    %c0_65 = arith.constant 0 : index
    %145 = vector.load %arg16[%c0_64, %c0_65] : memref<1x128xf32, #tpu.memory_space<vmem>>, vector<1x128xf32>
    %146 = vector.broadcast %145 : vector<1x128xf32> to vector<16x128xf32>
    %147 = arith.addf %144, %146 : vector<16x128xf32>
    %cst_66 = arith.constant 0.000000e+00 : f32
    %148 = vector.broadcast %cst_66 : f32 to vector<16x96xf32>
    %149 = tpu.concatenate %100, %148 in 1 : vector<16x32xf32>, vector<16x96xf32> -> vector<16x128xf32>
    %150 = arith.addf %149, %147 : vector<16x128xf32>
    %c0_67 = arith.constant 0 : index
    %c0_68 = arith.constant 0 : index
    %151 = vector.load %arg17[%c0_67, %c0_68] : memref<16x128xf32, #tpu.memory_space<vmem>>, vector<16x128xf32>
    tpu.vector_store %arg17[%c0_67, %c0_68], %150 {strides = array<i32>} : memref<16x128xf32, #tpu.memory_space<vmem>>, vector<16x128xf32>,
    return
  }
}

</mosaic_0001>

<bundles_post_ra>
// kernel: tpu_custom_call.1
= control target key start
LH: loop header
LB: loop body
LE: loop exit
PB: predicated region body
PF: predicated region fallthrough
CT: control target
= control target key end

     0   :  { %s2348_s0 = inlined_call_operand.vmem [shape: f32[2,8,32], index: 0, kind: input, shape index: {}]   ;;  %s2349_s1 = inlined_call_operand.vmem [shape: f32[1,32], index: 1, kind: input, shape index: {}]   ;;  %s2350_s2 = inlined_call_operand.vmem [shape: f32[1,32], index: 2, kind: input, shape index: {}]   ;;  %s2351_s3 = inlined_call_operand.vmem [shape: f32[4,32,8], index: 3, kind: input, shape index: {}]   ;;  %s2352_s4 = inlined_call_operand.vmem [shape: f32[4,1,8], index: 4, kind: input, shape index: {}]   ;;  %s2353_s5 = inlined_call_operand.vmem [shape: f32[4,32,8], index: 5, kind: input, shape index: {}]   ;;  %s2354_s6 = inlined_call_operand.vmem [shape: f32[4,1,8], index: 6, kind: input, shape index: {}]   ;;  %s2355_s7 = inlined_call_operand.vmem [shape: f32[4,32,8], index: 7, kind: input, shape index: {}]   ;;  %s2356_s8 = inlined_call_operand.vmem [shape: f32[4,1,8], index: 8, kind: input, shape index: {}]   ;;  %s2357_s9 = inlined_call_operand.vmem [shape: f32[4,8,32], index: 9, kind: input, shape index: {}]   ;;  %s2358_s10 = inlined_call_operand.vmem [shape: f32[1,32], index: 10, kind: input, shape index: {}]   ;;  %s2359_s11 = inlined_call_operand.vmem [shape: f32[1,32], index: 11, kind: input, shape index: {}]   ;;  %s2360_s12 = inlined_call_operand.vmem [shape: f32[1,32], index: 12, kind: input, shape index: {}]   ;;  %s2361_s13 = inlined_call_operand.vmem [shape: f32[32,128], index: 13, kind: input, shape index: {}]   ;;  %s2362_s14 = inlined_call_operand.vmem [shape: f32[1,128], index: 14, kind: input, shape index: {}]   ;;  %s2363_s15 = inlined_call_operand.vmem [shape: f32[128,128], index: 15, kind: input, shape index: {}]   ;;  %s2364_s16 = inlined_call_operand.vmem [shape: f32[1,128], index: 16, kind: input, shape index: {}]   ;;  %s2365_s17 = inlined_call_operand.hbm [shape: f32[16,128], index: 17, kind: output, shape index: {}]  }
   0x1   :  { %2367 = sst [smem:[#allocation5_spill]] %s2348_s0 }
   0x2   :  { %2368 = sst [smem:[#allocation6_spill]] %s2349_s1 }
   0x3   :  { %s2369_s26 = sld [smem:[#allocation5_spill]]  ;;  %vm61_vm0 = vcmask 261120  }
   0x9   :  { %v57_v0 = vld [vmem:[%s2369_s26] sm:$0xff]  ;;  %v58_v2 = vld [vmem:[%s2369_s26 + $0x8] sm:$0xff] }
   0xa   :  { %v62_v1 = vsel %vm61_vm0, %v57_v0, 0.0  ;;  %v65_v3 = vsel %vm61_vm0, %v58_v2, 0.0 }
   0xb   :  { %63 = vadd.xlane.f32.xlu0 %v62_v1 }
   0xc   :  { %22 = vsyncpa [#allocation3], 0  ;;  %v1740_v4 = vmov 32.0   ;;  %v126_v21 = vld [vmem:[%s2351_s3 + $0x18] sm:$0xff]  ;;  %v125_v24 = vld [vmem:[%s2351_s3 + $0x10] sm:$0xff]  ;;  %s2370_s21 = sld [smem:[#allocation6_spill]] }
   0xd   :  { %1666 = vrcp.f32 %v1740_v4  ;;  %v130_v22 = vld [vmem:[%s2351_s3 + $0x38] sm:$0xff]  ;;  %214 = vmatpush.msra.mxu0 %v126_v21  ;;  %v129_v25 = vld [vmem:[%s2351_s3 + $0x30] sm:$0xff]  ;;  %v124_v27 = vld [vmem:[%s2351_s3 + $0x8] sm:$0xff]  ;;  %vm709_vm8 = vcmask 64512   ;;  %s1573_s18 = sshll.u32 %s2365_s17, 4  ;;  %s1742_s19 = smov 128   ;;  %s1574_s18 = int_to_ptr.hbm [resolvable:$true] %s1573_s18 }
   0xe   :  { %v1865_v23 = vld [vmem:[%s2351_s3 + $0x78] sm:$0xff]  ;;  %234 = vmatpush.msra.mxu2 %v130_v22  ;;  %v1877_v26 = vld [vmem:[%s2351_s3 + $0x70] sm:$0xff]  ;;  %v128_v28 = vld [vmem:[%s2351_s3 + $0x28] sm:$0xff] }
   0xf   :  { %274 = vmatpush.msra.mxu3 %v1865_v23  ;;  %215 = vmatpush.msra.mxu0 %v125_v24  ;;  %v1889_v29 = vld [vmem:[%s2351_s3 + $0x68] sm:$0xff]  ;;  %v123_v30 = vld [vmem:[%s2351_s3] sm:$0xff]  ;;  %v1907_v33 = vld [vmem:[%s2351_s3 + $0x58] sm:$0xff] }
  0x10   :  { %235 = vmatpush.msra.mxu2 %v129_v25  ;;  %v127_v31 = vld [vmem:[%s2351_s3 + $0x20] sm:$0xff]  ;;  %v1912_v34 = vld [vmem:[%s2353_s5 + $0x38] sm:$0xff]  ;;  %v1919_v36 = vld [vmem:[%s2351_s3 + $0x50] sm:$0xff] }
  0x11   :  { %275 = vmatpush.msra.mxu3 %v1877_v26  ;;  %216 = vmatpush.msra.mxu0 %v124_v27  ;;  %v1901_v32 = vld [vmem:[%s2351_s3 + $0x60] sm:$0xff]  ;;  %v1924_v37 = vld [vmem:[%s2353_s5 + $0x30] sm:$0xff]  ;;  %v1932_v39 = vld [vmem:[%s2351_s3 + $0x48] sm:$0xff] }
  0x12   :  { %236 = vmatpush.msra.mxu2 %v128_v28  ;;  %489 = vmatpush.msra.mxu1 %v1912_v34  ;;  %v1937_v40 = vld [vmem:[%s2353_s5 + $0x28] sm:$0xff]  ;;  %v131_v42 = vld [vmem:[%s2351_s3 + $0x40] sm:$0xff]  ;;  %v1953_v44 = vld [vmem:[%s2355_s7 + $0x38] sm:$0xff] }
  0x13   :  { %66 = vadd.xlane.f32.xlu0 %v65_v3  ;;  %v1667_v5 = vpop.eup %1666  ;;  %276 = vmatpush.msra.mxu3 %v1889_v29  ;;  %v1947_v43 = vld [vmem:[%s2353_s5 + $0x20] sm:$0xff]  ;;  %v1959_v45 = vld [vmem:[%s2355_s7 + $0x30] sm:$0xff]  ;;  %v1964_v47 = vld [vmem:[%s2355_s7 + $0x28] sm:$0xff] }
  0x14   :  { %v69_v6 = vmul.f32 32.0, %v1667_v5  ;;  %vm73_vm1 = vweird.f32 %v1667_v5  ;;  %217 = vmatpush.msra.mxu0 %v123_v30  ;;  %237 = vmatpush.msra.mxu2 %v127_v31  ;;  %v1971_v49 = vld [vmem:[%s2355_s7 + $0x20] sm:$0xff] }
  0x15   :  { %277 = vmatpush.msra.mxu3 %v1901_v32  ;;  %490 = vmatpush.msra.mxu1 %v1924_v37  ;;  %v1647_v59 = vld [vmem:[%s2370_s21] ss:$0 sm:$0xff] }
  0x16   :  { %v70_v7 = vsub.f32 1.0, %v69_v6  ;;  %297 = vmatpush.msrb.mxu0 %v126_v21  ;;  %254 = vmatpush.msrb.mxu2 %v1907_v33  ;;  %v1648_v62 = vld [vmem:[%s2350_s2] ss:$0 sm:$0xff]  ;;  %v165_v21 = vld [vmem:[%s2355_s7 + $0x10] sm:$0xff] }
  0x17   :  { %317 = vmatpush.msrb.mxu3 %v130_v22  ;;  %491 = vmatpush.msra.mxu1 %v1937_v40  ;;  %v152_v22 = vld [vmem:[%s2353_s5 + $0x48] sm:$0xff] }
  0x18   :  { %v71_v8 = vmul.f32 %v1667_v5, %v70_v7  ;;  %298 = vmatpush.msrb.mxu0 %v125_v24  ;;  %255 = vmatpush.msrb.mxu2 %v1919_v36  ;;  %v145_v7 = vld [vmem:[%s2353_s5 + $0x10] sm:$0xff]  ;;  %v151_v24 = vld [vmem:[%s2353_s5 + $0x40] sm:$0xff] }
  0x19   :  { %318 = vmatpush.msrb.mxu3 %v129_v25  ;;  %492 = vmatpush.msra.mxu1 %v1947_v43  ;;  %v163_v25 = vld [vmem:[%s2355_s7] sm:$0xff] }
  0x1a   :  { %v72_v9 = vadd.f32 %v1667_v5, %v71_v8  ;;  %299 = vmatpush.msrb.mxu0 %v124_v27  ;;  %256 = vmatpush.msrb.mxu2 %v1932_v39  ;;  %v177_v27 = vld [vmem:[%s2355_s7 + $0x70] sm:$0xff] }
  0x1b   :  { %319 = vmatpush.msrb.mxu3 %v128_v28  ;;  %581 = vmatpush.msrb.mxu1 %v1953_v44  ;;  %v176_v28 = vld [vmem:[%s2355_s7 + $0x68] sm:$0xff] }
  0x1c   :  { %v1842_v10 = vsel %vm73_vm1, %v1667_v5, %v72_v9  ;;  %300 = vmatpush.msrb.mxu0 %v123_v30  ;;  %257 = vmatpush.msrb.mxu2 %v131_v42  ;;  %v146_v5 = vld [vmem:[%s2353_s5 + $0x18] sm:$0xff]  ;;  %v144_v9 = vld [vmem:[%s2353_s5 + $0x8] sm:$0xff]  ;;  %v175_v30 = vld [vmem:[%s2355_s7 + $0x60] sm:$0xff] }
  0x1d   :  { %320 = vmatpush.msrb.mxu3 %v127_v31  ;;  %582 = vmatpush.msrb.mxu1 %v1959_v45  ;;  %v173_v31 = vld [vmem:[%s2355_s7 + $0x50] sm:$0xff] }
  0x1f   :  { %583 = vmatpush.msrb.mxu1 %v1964_v47 }
  0x21   :  { %584 = vmatpush.msrb.mxu1 %v1971_v49 }
  0x7e   :  { %v64_v11 = vpop.xlane.xlu0 %63 }
  0x7f   :  { %v75_v12 = vmul.f32 %v1842_v10, %v64_v11 }
  0x81   :  { %v1845_v13 = vsub.f32 %v57_v0, %v75_v12 }
  0x83   :  { %v79_v14 = vmul.f32 %v1845_v13, %v1845_v13 }
  0x85   :  { %v81_v15 = vsel %vm61_vm0, %v79_v14, 0.0  ;;  %v158_v14 = vld [vmem:[%s2353_s5 + $0x78] sm:$0xff] }
  0x86   :  { %82 = vadd.xlane.f32.xlu1 %v81_v15  ;;  %v67_v16 = vpop.xlane.xlu0 %66  ;;  %v157_v15 = vld [vmem:[%s2353_s5 + $0x70] sm:$0xff] }
  0x87   :  { %v76_v17 = vmul.f32 %v1842_v10, %v67_v16  ;;  %v156_v16 = vld [vmem:[%s2353_s5 + $0x68] sm:$0xff] }
  0x89   :  { %v1851_v18 = vsub.f32 %v58_v2, %v76_v17  ;;  %v155_v17 = vld [vmem:[%s2353_s5 + $0x60] sm:$0xff] }
  0x8b   :  { %v80_v19 = vmul.f32 %v1851_v18, %v1851_v18 }
  0x8d   :  { %v84_v20 = vsel %vm61_vm0, %v80_v19, 0.0  ;;  %v166_v19 = vld [vmem:[%s2355_s7 + $0x18] sm:$0xff] }
  0x8e   :  { %85 = vadd.xlane.f32.xlu1 %v84_v20  ;;  %v153_v20 = vld [vmem:[%s2353_s5 + $0x50] sm:$0xff] }
  0xf9   :  { %v83_v35 = vpop.xlane.xlu1 %82 }
  0xfa   :  { %v87_v38 = vmul.f32 %v83_v35, %v1842_v10 }
  0xfc   :  { %v89_v41 = vadd.f32 1e-05, %v87_v38  ;;  %v1654_v38 = vld [vmem:[%s2354_s6] ss:$0 sm:$0xff] }
  0xfe   :  { %1668 = vrsqrt.f32 %v89_v41  ;;  %vm97_vm3 = vweird.f32 %v89_v41 }
 0x101   :  { %v86_v46 = vpop.xlane.xlu1 %85 }
 0x102   :  { %v88_v48 = vmul.f32 %v86_v46, %v1842_v10 }
 0x104   :  { %v1669_v50 = vpop.eup %1668  ;;  %v90_v51 = vadd.f32 1e-05, %v88_v48 }
 0x105   :  { %v92_v52 = vmul.f32 %v1669_v50, %v89_v41  ;;  %vm98_vm2 = vweird.f32 %v1669_v50  ;;  %v1649_v41 = vld [vmem:[%s2352_s4] ss:$0 sm:$0xff] }
 0x106   :  { %1670 = vrsqrt.f32 %v90_v51  ;;  %vm99_vm4 = vmor %vm97_vm3, %vm98_vm2  ;;  %vm107_vm5 = vweird.f32 %v90_v51 }
 0x107   :  { %v93_v53 = vmul.f32 %v1669_v50, %v92_v52  ;;  %v1656_v52 = vld [vmem:[%s2354_s6 + $0x3] ss:$0 sm:$0xff] }
 0x109   :  { %v94_v54 = vmul.f32 0.5, %v93_v53  ;;  %v1657_v53 = vld [vmem:[%s2356_s8] ss:$0 sm:$0xff] }
 0x10b   :  { %v95_v55 = vsub.f32 1.5, %v94_v54  ;;  %v1650_v54 = vld [vmem:[%s2352_s4 + $0x1] ss:$0 sm:$0xff] }
 0x10c   :  { %v1671_v56 = vpop.eup %1670 }
 0x10d   :  { %v96_v57 = vmul.f32 %v1669_v50, %v95_v55  ;;  %v102_v58 = vmul.f32 %v1671_v56, %v90_v51  ;;  %vm108_vm6 = vweird.f32 %v1671_v56  ;;  %v1652_v51 = vld [vmem:[%s2354_s6 + $0x1] ss:$0 sm:$0xff] }
 0x10e   :  { %vm109_vm7 = vmor %vm107_vm5, %vm108_vm6 }
 0x10f   :  { %v100_v60 = vsel %vm99_vm4, %v1669_v50, %v96_v57  ;;  %v103_v61 = vmul.f32 %v1671_v56, %v102_v58  ;;  %v1651_v57 = vld [vmem:[%s2352_s4 + $0x3] ss:$0 sm:$0xff]  ;;  %v1655_v58 = vld [vmem:[%s2356_s8 + $0x1] ss:$0 sm:$0xff] }
 0x110   :  { %v111_v63 = vmul.f32 %v100_v60, %v1845_v13  ;;  %v143_v13 = vld [vmem:[%s2353_s5] sm:$0xff] }
 0x111   :  { %v104_v0 = vmul.f32 0.5, %v103_v61 }
 0x112   :  { %v116_v1 = vmul.f32 %v1647_v59, %v111_v63 }
 0x113   :  { %v105_v2 = vsub.f32 1.5, %v104_v0 }
 0x114   :  { %v1982_v3 = vadd.f32 %v1648_v62, %v116_v1 }
 0x115   :  { %v106_v4 = vmul.f32 %v1671_v56, %v105_v2 }
 0x116   :  { %1585 = vmatmul.msk.f32.vlgmr.msra.gmra.mxu0 %vm61_vm0, %v1982_v3  ;;  %1586 = vmatmul.msk.f32.vlgmr.msra.gmra.mxu2 %vm61_vm0, %v1982_v3 }
 0x117   :  { %v110_v6 = vsel %vm109_vm7, %v1671_v56, %v106_v4  ;;  %1588 = vmatmul.msk.f32.vlgmr.msra.gmra.mxu3 %vm61_vm0, %v1982_v3  ;;  %337 = vmatpush.msra.mxu2 %v1907_v33  ;;  %v171_v33 = vld [vmem:[%s2355_s7 + $0x40] sm:$0xff] }
 0x118   :  { %v112_v8 = vmul.f32 %v110_v6, %v1851_v18  ;;  %357 = vmatpush.msra.mxu3 %v1865_v23  ;;  %389 = vmatpush.msra.mxu0 %v146_v5  ;;  %v154_v18 = vld [vmem:[%s2353_s5 + $0x58] sm:$0xff]  ;;  %v164_v23 = vld [vmem:[%s2355_s7 + $0x8] sm:$0xff]  ;;  %v1658_v4 = vld [vmem:[%s2354_s6 + $0x2] ss:$0 sm:$0xff] }
 0x119   :  { %338 = vmatpush.msra.mxu2 %v1919_v36 }
 0x11a   :  { %v117_v11 = vmul.f32 %v1647_v59, %v112_v8  ;;  %358 = vmatpush.msra.mxu3 %v1877_v26  ;;  %390 = vmatpush.msra.mxu0 %v145_v7  ;;  %v178_v26 = vld [vmem:[%s2355_s7 + $0x78] sm:$0xff] }
 0x11b   :  { %339 = vmatpush.msra.mxu2 %v1932_v39 }
 0x11c   :  { %v2005_v12 = vadd.f32 %v1648_v62, %v117_v11  ;;  %359 = vmatpush.msra.mxu3 %v1889_v29  ;;  %391 = vmatpush.msra.mxu0 %v144_v9  ;;  %v174_v29 = vld [vmem:[%s2355_s7 + $0x58] sm:$0xff] }
 0x11d   :  { %340 = vmatpush.msra.mxu2 %v131_v42 }
 0x11e   :  { %1587 = vmatmul.msk.f32.vlgmr.msrb.gmra.mxu2 %vm61_vm0, %v1982_v3  ;;  %1589 = vmatmul.msk.f32.vlgmr.msrb.gmra.mxu0 %vm61_vm0, %v2005_v12 }
 0x11f   :  { %1590 = vmatmul.msk.f32.vlgmr.msrb.gmra.mxu3 %vm61_vm0, %v2005_v12  ;;  %1598 = vmatmul.msk.f32.vlgmr.msra.gmra.mxu1 %vm61_vm0, %v2005_v12 }
 0x120   :  { %360 = vmatpush.msra.mxu3 %v1901_v32  ;;  %392 = vmatpush.msra.mxu0 %v143_v13  ;;  %v172_v32 = vld [vmem:[%s2355_s7 + $0x48] sm:$0xff] }
 0x121   :  { %409 = vmatpush.msrb.mxu2 %v1912_v34  ;;  %661 = vmatpush.msra.mxu1 %v1953_v44 }
 0x122   :  { %449 = vmatpush.msrb.mxu3 %v158_v14  ;;  %469 = vmatpush.msrb.mxu0 %v146_v5  ;;  %v1653_v5 = vld [vmem:[%s2352_s4 + $0x2] ss:$0 sm:$0xff] }
 0x123   :  { %410 = vmatpush.msrb.mxu2 %v1924_v37  ;;  %662 = vmatpush.msra.mxu1 %v1959_v45 }
 0x124   :  { %450 = vmatpush.msrb.mxu3 %v157_v15  ;;  %470 = vmatpush.msrb.mxu0 %v145_v7 }
 0x125   :  { %411 = vmatpush.msrb.mxu2 %v1937_v40  ;;  %663 = vmatpush.msra.mxu1 %v1964_v47 }
 0x126   :  { %451 = vmatpush.msrb.mxu3 %v156_v16  ;;  %1591 = vmatmul.msk.f32.vlgmr.msra.gmra.mxu2 %vm61_vm0, %v2005_v12 }
 0x127   :  { %1593 = vmatmul.msk.f32.vlgmr.msra.gmra.mxu0 %vm61_vm0, %v1982_v3  ;;  %1592 = vmatmul.msk.f32.vlgmr.msra.gmra.mxu3 %vm61_vm0, %v2005_v12 }
 0x128   :  { %1602 = vmatmul.msk.f32.vlgmr.msrb.gmra.mxu1 %vm61_vm0, %v1982_v3  ;;  %471 = vmatpush.msrb.mxu0 %v144_v9 }
 0x129   :  { %412 = vmatpush.msrb.mxu2 %v1947_v43  ;;  %452 = vmatpush.msrb.mxu3 %v155_v17 }
 0x12a   :  { %472 = vmatpush.msrb.mxu0 %v143_v13  ;;  %664 = vmatpush.msra.mxu1 %v1971_v49 }
 0x12b   :  { %429 = vmatpush.msra.mxu2 %v154_v18  ;;  %529 = vmatpush.msra.mxu3 %v158_v14 }
 0x12c   :  { %561 = vmatpush.msra.mxu0 %v166_v19 }
 0x12d   :  { %430 = vmatpush.msra.mxu2 %v153_v20  ;;  %530 = vmatpush.msra.mxu3 %v157_v15 }
 0x12e   :  { %1594 = vmatmul.msk.f32.vlgmr.msrb.gmra.mxu2 %vm61_vm0, %v1982_v3  ;;  %562 = vmatpush.msra.mxu0 %v165_v21 }
 0x12f   :  { %1597 = vmatmul.msk.f32.vlgmr.msrb.gmra.mxu0 %vm61_vm0, %v2005_v12  ;;  %1596 = vmatmul.msk.f32.vlgmr.msrb.gmra.mxu3 %vm61_vm0, %v1982_v3 }
 0x130   :  { %1606 = vmatmul.msk.f32.vlgmr.msra.gmra.mxu1 %vm61_vm0, %v2005_v12  ;;  %431 = vmatpush.msra.mxu2 %v152_v22 }
 0x131   :  { %531 = vmatpush.msra.mxu3 %v156_v16  ;;  %563 = vmatpush.msra.mxu0 %v164_v23 }
 0x132   :  { %432 = vmatpush.msra.mxu2 %v151_v24 }
 0x133   :  { %532 = vmatpush.msra.mxu3 %v155_v17  ;;  %564 = vmatpush.msra.mxu0 %v163_v25 }
 0x134   :  { %509 = vmatpush.msrb.mxu2 %v154_v18  ;;  %v1659_v18 = vld [vmem:[%s2356_s8 + $0x3] ss:$0 sm:$0xff] }
 0x135   :  { %621 = vmatpush.msrb.mxu3 %v178_v26  ;;  %641 = vmatpush.msrb.mxu0 %v166_v19 }
 0x136   :  { %510 = vmatpush.msrb.mxu2 %v153_v20 }
 0x137   :  { %1595 = vmatmul.msk.f32.vlgmr.msra.gmra.mxu2 %vm61_vm0, %v1982_v3  ;;  %1601 = vmatmul.msk.f32.vlgmr.msra.gmra.mxu0 %vm61_vm0, %v1982_v3 }
 0x138   :  { %1600 = vmatmul.msk.f32.vlgmr.msra.gmra.mxu3 %vm61_vm0, %v2005_v12  ;;  %642 = vmatpush.msrb.mxu0 %v165_v21 }
 0x139   :  { %622 = vmatpush.msrb.mxu3 %v177_v27  ;;  %511 = vmatpush.msrb.mxu2 %v152_v22 }
 0x13a   :  { %643 = vmatpush.msrb.mxu0 %v164_v23 }
 0x13b   :  { %623 = vmatpush.msrb.mxu3 %v176_v28  ;;  %512 = vmatpush.msrb.mxu2 %v151_v24  ;;  %v1660_v24 = vld [vmem:[%s2356_s8 + $0x2] ss:$0 sm:$0xff] }
 0x13c   :  { %644 = vmatpush.msrb.mxu0 %v163_v25 }
 0x13d   :  { %601 = vmatpush.msra.mxu2 %v174_v29  ;;  %624 = vmatpush.msrb.mxu3 %v175_v30 }
 0x13f   :  { %701 = vmatpush.msra.mxu3 %v178_v26  ;;  %602 = vmatpush.msra.mxu2 %v173_v31 }
 0x140   :  { %1599 = vmatmul.msk.f32.vlgmr.msrb.gmra.mxu2 %vm61_vm0, %v2005_v12  ;;  %1605 = vmatmul.msk.f32.vlgmr.msrb.gmra.mxu0 %vm61_vm0, %v2005_v12 }
 0x141   :  { %1604 = vmatmul.msk.f32.vlgmr.msrb.gmra.mxu3 %vm61_vm0, %v1982_v3  ;;  %603 = vmatpush.msra.mxu2 %v172_v32 }
 0x142   :  { %702 = vmatpush.msra.mxu3 %v177_v27 }
 0x143   :  { %604 = vmatpush.msra.mxu2 %v171_v33 }
 0x144   :  { %703 = vmatpush.msra.mxu3 %v176_v28 }
 0x145   :  { %681 = vmatpush.msrb.mxu2 %v174_v29 }
 0x146   :  { %704 = vmatpush.msra.mxu3 %v175_v30 }
 0x147   :  { %682 = vmatpush.msrb.mxu2 %v173_v31  ;;  %v918_v31 = vlaneseq }
 0x148   :  { %1603 = vmatmul.msk.f32.vlgmr.msra.gmra.mxu2 %vm61_vm0, %v1982_v3 }
 0x149   :  { %1608 = vmatmul.msk.f32.vlgmr.msra.gmra.mxu3 %vm61_vm0, %v2005_v12  ;;  %683 = vmatpush.msrb.mxu2 %v172_v32  ;;  %v919_v32 = vshrl.u32 %v918_v31, 7 }
 0x14b   :  { %684 = vmatpush.msrb.mxu2 %v171_v33  ;;  %v921_v33 = vand.u32 127, %v918_v31 }
 0x14d   :  { %vm2174_vm9 = vcmp.le.s32.totalorder %v921_v33, %v919_v32 }
 0x150   :  { %1607 = vmatmul.msk.f32.vlgmr.msrb.gmra.mxu2 %vm61_vm0, %v2005_v12 }
 0x193   :  { %v219_v34 = vpop.f32.mrf.mxu0 }
 0x194   :  { %v220_v44 = vadd.f32 %v1649_v41, %v219_v34 }
 0x199   :  { %v239_v35 = vpop.f32.mrf.mxu2 }
 0x19a   :  { %v279_v36 = vpop.f32.mrf.mxu3  ;;  %v240_v1 = vadd.f32 %v1650_v54, %v239_v35 }
 0x19b   :  { %v302_v37 = vpop.f32.mrf.mxu0  ;;  %v280_v2 = vadd.f32 %v1651_v57, %v279_v36 }
 0x19c   :  { %v494_v45 = vpop.f32.mrf.mxu1  ;;  %v303_v50 = vadd.f32 %v1649_v41, %v302_v37 }
 0x19d   :  { %v495_v61 = vadd.f32 %v1652_v51, %v494_v45 }
 0x1a1   :  { %v259_v39 = vpop.f32.mrf.mxu2 }
 0x1a2   :  { %v322_v40 = vpop.f32.mrf.mxu3  ;;  %v260_v14 = vadd.f32 %v1653_v5, %v259_v39 }
 0x1a3   :  { %v323_v15 = vadd.f32 %v1650_v54, %v322_v40 }
 0x1a4   :  { %v394_v42 = vpop.f32.mrf.mxu0 }
 0x1a5   :  { %v395_v43 = vadd.f32 %v1654_v38, %v394_v42  ;;  %v586_v55 = vpop.f32.mrf.mxu1 }
 0x1a6   :  { %v587_v3 = vadd.f32 %v1655_v58, %v586_v55 }
 0x1a7   :  { %1609 = vmatpush.xpose.msk.msra.mxu0 %vm709_vm8, %v395_v43 }
 0x1a9   :  { %v342_v46 = vpop.f32.mrf.mxu2 }
 0x1aa   :  { %1610 = vmatmul.msk.f32.vlgmr.msra.gmra.mxu0 %vm709_vm8, %v220_v44  ;;  %v362_v47 = vpop.f32.mrf.mxu3  ;;  %v343_v23 = vadd.f32 %v1653_v5, %v342_v46 }
 0x1ab   :  { %v363_v16 = vadd.f32 %v1651_v57, %v362_v47 }
 0x1ac   :  { %v474_v48 = vpop.f32.mrf.mxu0 }
 0x1ad   :  { %v475_v49 = vadd.f32 %v1654_v38, %v474_v48  ;;  %v666_v9 = vpop.f32.mrf.mxu1 }
 0x1ae   :  { %v667_v17 = vadd.f32 %v1655_v58, %v666_v9 }
 0x1af   :  { %1617 = vmatpush.xpose.msk.msrb.mxu0 %vm709_vm8, %v475_v49 }
 0x1b1   :  { %v414_v56 = vpop.f32.mrf.mxu2 }
 0x1b2   :  { %1618 = vmatmul.msk.f32.vlgmr.msrb.gmra.mxu0 %vm709_vm8, %v303_v50  ;;  %v415_v59 = vadd.f32 %v1652_v51, %v414_v56  ;;  %v454_v60 = vpop.f32.mrf.mxu3 }
 0x1b3   :  { %v455_v62 = vadd.f32 %v1656_v52, %v454_v60 }
 0x1b4   :  { %v566_v63 = vpop.f32.mrf.mxu0  ;;  %1611 = vmatpush.xpose.msk.msrb.mxu1 %vm709_vm8, %v415_v59 }
 0x1b5   :  { %v567_v0 = vadd.f32 %v1657_v53, %v566_v63  ;;  %1615 = vmatpush.xpose.msk.msrb.mxu3 %vm709_vm8, %v455_v62 }
 0x1b7   :  { %1037 = vmatpush.msra.mxu0 %v567_v0  ;;  %1612 = vmatmul.msk.f32.vlgmr.msrb.gmra.mxu1 %vm709_vm8, %v240_v1 }
 0x1b8   :  { %1619 = vmatpush.xpose.msk.msra.mxu1 %vm709_vm8, %v495_v61  ;;  %1616 = vmatmul.msk.f32.vlgmr.msrb.gmra.mxu3 %vm709_vm8, %v280_v2 }
 0x1ba   :  { %v434_v6 = vpop.f32.mrf.mxu2 }
 0x1bb   :  { %v435_v7 = vadd.f32 %v1658_v4, %v434_v6  ;;  %v534_v8 = vpop.f32.mrf.mxu3 }
 0x1bc   :  { %1060 = vmatpush.msrb.mxu1 %v587_v3  ;;  %v535_v11 = vadd.f32 %v1656_v52, %v534_v8 }
 0x1bd   :  { %v646_v12 = vpop.f32.mrf.mxu0  ;;  %1613 = vmatpush.xpose.msk.msra.mxu2 %vm709_vm8, %v435_v7 }
 0x1be   :  { %v647_v13 = vadd.f32 %v1657_v53, %v646_v12  ;;  %1623 = vmatpush.xpose.msk.msra.mxu3 %vm709_vm8, %v535_v11 }
 0x1bf   :  { %1620 = vmatmul.msk.f32.vlgmr.msra.gmra.mxu1 %vm709_vm8, %v323_v15 }
 0x1c0   :  { %1129 = vmatpush.msrb.mxu0 %v647_v13  ;;  %1614 = vmatmul.msk.f32.vlgmr.msra.gmra.mxu2 %vm709_vm8, %v260_v14 }
 0x1c1   :  { %1624 = vmatmul.msk.f32.vlgmr.msra.gmra.mxu3 %vm709_vm8, %v363_v16  ;;  %1152 = vmatpush.msra.mxu1 %v667_v17 }
 0x1c3   :  { %v514_v19 = vpop.f32.mrf.mxu2 }
 0x1c4   :  { %v515_v20 = vadd.f32 %v1658_v4, %v514_v19  ;;  %v626_v21 = vpop.f32.mrf.mxu3 }
 0x1c5   :  { %v627_v22 = vadd.f32 %v1659_v18, %v626_v21 }
 0x1c6   :  { %1621 = vmatpush.xpose.msk.msrb.mxu2 %vm709_vm8, %v515_v20 }
 0x1c7   :  { %1106 = vmatpush.msrb.mxu3 %v627_v22 }
 0x1c9   :  { %1622 = vmatmul.msk.f32.vlgmr.msrb.gmra.mxu2 %vm709_vm8, %v343_v23 }
 0x1cb   :  { %v606_v25 = vpop.f32.mrf.mxu2 }
 0x1cc   :  { %v607_v26 = vadd.f32 %v1660_v24, %v606_v25  ;;  %v706_v27 = vpop.f32.mrf.mxu3 }
 0x1cd   :  { %v707_v28 = vadd.f32 %v1659_v18, %v706_v27 }
 0x1ce   :  { %1083 = vmatpush.msra.mxu2 %v607_v26 }
 0x1cf   :  { %1198 = vmatpush.msra.mxu3 %v707_v28 }
 0x1d3   :  { %v686_v29 = vpop.f32.mrf.mxu2 }
 0x1d4   :  { %v687_v30 = vadd.f32 %v1660_v24, %v686_v29 }
 0x1d6   :  { %1175 = vmatpush.msrb.mxu2 %v687_v30 }
 0x227   :  { %v733_v35 = vpop.f32.mrf.mxu0 }
 0x228   :  { %v923_v36 = vsel %vm2174_vm9, %v733_v35, -1e+30 }
 0x229   :  { %v931_v37 = vsel %vm709_vm8, %v923_v36, -inf }
 0x22a   :  { %932 = vmax.xlane.f32.xlu1 %v931_v37 }
 0x22f   :  { %v837_v38 = vpop.f32.mrf.mxu0 }
 0x230   :  { %v927_v39 = vsel %vm2174_vm9, %v837_v38, -1e+30 }
 0x231   :  { %v943_v40 = vsel %vm709_vm8, %v927_v39, -inf }
 0x232   :  { %944 = vmax.xlane.f32.xlu1 %v943_v40 }
 0x234   :  { %v759_v48 = vpop.f32.mrf.mxu1 }
 0x235   :  { %v924_v52 = vsel %vm2174_vm9, %v759_v48, -1e+30 }
 0x236   :  { %v934_v54 = vsel %vm709_vm8, %v924_v52, -inf }
 0x23b   :  { %v811_v43 = vpop.f32.mrf.mxu3 }
 0x23c   :  { %v926_v45 = vsel %vm2174_vm9, %v811_v43, -1e+30  ;;  %v863_v56 = vpop.f32.mrf.mxu1 }
 0x23d   :  { %v940_v50 = vsel %vm709_vm8, %v926_v45, -inf  ;;  %v928_v57 = vsel %vm2174_vm9, %v863_v56, -1e+30 }
 0x23e   :  { %v946_v58 = vsel %vm709_vm8, %v928_v57, -inf }
 0x243   :  { %v785_v41 = vpop.f32.mrf.mxu2 }
 0x244   :  { %v925_v42 = vsel %vm2174_vm9, %v785_v41, -1e+30  ;;  %v915_v51 = vpop.f32.mrf.mxu3 }
 0x245   :  { %v937_v44 = vsel %vm709_vm8, %v925_v42, -inf  ;;  %v930_v53 = vsel %vm2174_vm9, %v915_v51, -1e+30 }
 0x246   :  { %938 = vmax.xlane.f32.xlu2 %v937_v44  ;;  %v952_v55 = vsel %vm709_vm8, %v930_v53, -inf }
 0x24c   :  { %v889_v46 = vpop.f32.mrf.mxu2 }
 0x24d   :  { %v929_v47 = vsel %vm2174_vm9, %v889_v46, -1e+30 }
 0x24e   :  { %v949_v49 = vsel %vm709_vm8, %v929_v47, -inf  ;;  %941 = vmax.xlane.f32.xlu2 %v940_v50 }
 0x24f   :  { %950 = vmax.xlane.f32.xlu0 %v949_v49 }
 0x256   :  { %935 = vmax.xlane.f32.xlu2 %v934_v54 }
 0x257   :  { %953 = vmax.xlane.f32.xlu0 %v952_v55 }
 0x25e   :  { %947 = vmax.xlane.f32.xlu2 %v946_v58 }
 0x29d   :  { %v933_v59 = vpop.xlane.xlu1 %932 }
 0x29e   :  { %v955_v62 = vsub.f32 %v923_v36, %v933_v59 }
 0x2a0   :  { %v963_v0 = vmul.f32 1.442695, %v955_v62  ;;  %v186_v62 = vld [vmem:[%s2357_s9 + $0x18] sm:$0xff] }
 0x2a5   :  { %v945_v1 = vpop.xlane.xlu1 %944 }
 0x2a6   :  { %v959_v7 = vsub.f32 %v927_v39, %v945_v1 }
 0x2a8   :  { %v971_v12 = vmul.f32 1.442695, %v959_v7 }
 0x2b9   :  { %v939_v60 = vpop.xlane.xlu2 %938 }
 0x2ba   :  { %v957_v61 = vsub.f32 %v925_v42, %v939_v60  ;;  %v185_v60 = vld [vmem:[%s2357_s9 + $0x10] sm:$0xff] }
 0x2bc   :  { %v967_v63 = vmul.f32 1.442695, %v957_v61  ;;  %v183_v61 = vld [vmem:[%s2357_s9] sm:$0xff] }
 0x2be   :  { %1672 = vpow2.f32 %v967_v63  ;;  %v184_v63 = vld [vmem:[%s2357_s9 + $0x8] sm:$0xff]  ;;  %s1741_s9 = smov [#allocation2]  }
 0x2bf   :  { %1674 = vpow2.f32 %v963_v0 }
 0x2c1   :  { %v942_v3 = vpop.xlane.xlu2 %941 }
 0x2c2   :  { %v951_v2 = vpop.xlane.xlu0 %950  ;;  %v958_v5 = vsub.f32 %v926_v45, %v942_v3 }
 0x2c3   :  { %v961_v4 = vsub.f32 %v929_v47, %v951_v2 }
 0x2c4   :  { %v1673_v6 = vpop.eup %1672  ;;  %v969_v9 = vmul.f32 1.442695, %v958_v5 }
 0x2c5   :  { %v975_v8 = vmul.f32 1.442695, %v961_v4  ;;  %v985_v11 = vsel %vm709_vm8, %v1673_v6, 0.0  ;;  %v1675_v15 = vpop.eup %1674 }
 0x2c6   :  { %986 = vadd.xlane.f32.xlu0 %v985_v11  ;;  %v979_v23 = vsel %vm709_vm8, %v1675_v15, 0.0 }
 0x2c7   :  { %1676 = vpow2.f32 %v975_v8 }
 0x2c8   :  { %1678 = vpow2.f32 %v969_v9 }
 0x2c9   :  { %v936_v13 = vpop.xlane.xlu2 %935  ;;  %1680 = vpow2.f32 %v971_v12 }
 0x2ca   :  { %v954_v14 = vpop.xlane.xlu0 %953  ;;  %v956_v16 = vsub.f32 %v924_v52, %v936_v13 }
 0x2cb   :  { %v962_v17 = vsub.f32 %v930_v53, %v954_v14 }
 0x2cc   :  { %v965_v19 = vmul.f32 1.442695, %v956_v16 }
 0x2cd   :  { %v1677_v18 = vpop.eup %1676  ;;  %v977_v20 = vmul.f32 1.442695, %v962_v17 }
 0x2ce   :  { %v1679_v21 = vpop.eup %1678  ;;  %v997_v22 = vsel %vm709_vm8, %v1677_v18, 0.0  ;;  %1682 = vpow2.f32 %v965_v19  ;;  %980 = vadd.xlane.f32.xlu0 %v979_v23 }
 0x2cf   :  { %998 = vadd.xlane.f32.xlu2 %v997_v22  ;;  %v988_v24 = vsel %vm709_vm8, %v1679_v21, 0.0  ;;  %1684 = vpow2.f32 %v977_v20  ;;  %v1681_v26 = vpop.eup %1680 }
 0x2d0   :  { %989 = vadd.xlane.f32.xlu1 %v988_v24  ;;  %v991_v32 = vsel %vm709_vm8, %v1681_v26, 0.0 }
 0x2d1   :  { %v948_v25 = vpop.xlane.xlu2 %947 }
 0x2d2   :  { %v960_v27 = vsub.f32 %v928_v57, %v948_v25 }
 0x2d4   :  { %v1683_v28 = vpop.eup %1682  ;;  %v973_v29 = vmul.f32 1.442695, %v960_v27 }
 0x2d5   :  { %v1685_v30 = vpop.eup %1684  ;;  %v982_v31 = vsel %vm709_vm8, %v1683_v28, 0.0 }
 0x2d6   :  { %1686 = vpow2.f32 %v973_v29  ;;  %v1000_v33 = vsel %vm709_vm8, %v1685_v30, 0.0  ;;  %992 = vadd.xlane.f32.xlu0 %v991_v32 }
 0x2d7   :  { %1001 = vadd.xlane.f32.xlu2 %v1000_v33 }
 0x2d8   :  { %983 = vadd.xlane.f32.xlu1 %v982_v31 }
 0x2dc   :  { %v1687_v34 = vpop.eup %1686 }
 0x2dd   :  { %v994_v35 = vsel %vm709_vm8, %v1687_v34, 0.0 }
 0x2e0   :  { %995 = vadd.xlane.f32.xlu1 %v994_v35 }
 0x339   :  { %v987_v36 = vpop.xlane.xlu0 %986 }
 0x33a   :  { %1688 = vrcp.f32 %v987_v36 }
 0x340   :  { %v1689_v37 = vpop.eup %1688 }
 0x341   :  { %v1013_v38 = vmul.f32 %v1689_v37, %v1673_v6  ;;  %v981_v40 = vpop.xlane.xlu0 %980  ;;  %v1713_v37 = vld [vmem:[%s2369_s26 + $0x8] sm:$0xff] }
 0x342   :  { %v999_v39 = vpop.xlane.xlu2 %998 }
 0x343   :  { %1690 = vrcp.f32 %v999_v39  ;;  %v990_v41 = vpop.xlane.xlu1 %989  ;;  %1627 = vmatmul.msk.f32.vlgmr.msra.gmra.mxu2 %vm709_vm8, %v1013_v38 }
 0x344   :  { %1692 = vrcp.f32 %v981_v40  ;;  %1267 = vmatpush.msra.mxu2 %v185_v60 }
 0x345   :  { %1694 = vrcp.f32 %v990_v41 }
 0x349   :  { %v1691_v42 = vpop.eup %1690  ;;  %v993_v45 = vpop.xlane.xlu0 %992 }
 0x34a   :  { %v1693_v43 = vpop.eup %1692  ;;  %v1017_v44 = vmul.f32 %v1691_v42, %v1677_v18  ;;  %v1002_v48 = vpop.xlane.xlu2 %1001  ;;  %1696 = vrcp.f32 %v993_v45  ;;  %v1661_v18 = vld [vmem:[%s2358_s10] ss:$0 sm:$0xff] }
 0x34b   :  { %v1695_v46 = vpop.eup %1694  ;;  %v1011_v47 = vmul.f32 %v1693_v43, %v1675_v15  ;;  %v984_v49 = vpop.xlane.xlu1 %983  ;;  %1698 = vrcp.f32 %v1002_v48 }
 0x34c   :  { %v1014_v50 = vmul.f32 %v1695_v46, %v1679_v21  ;;  %1631 = vmatmul.msk.f32.vlgmr.msrb.gmra.mxu2 %vm709_vm8, %v1017_v44  ;;  %1700 = vrcp.f32 %v984_v49 }
 0x34d   :  { %1625 = vmatmul.msk.f32.vlgmr.msra.gmra.mxu0 %vm709_vm8, %v1011_v47  ;;  %1359 = vmatpush.msrb.mxu2 %v185_v60 }
 0x34e   :  { %1628 = vmatmul.msk.f32.vlgmr.msrb.gmra.mxu3 %vm709_vm8, %v1014_v50  ;;  %1221 = vmatpush.msra.mxu0 %v183_v61  ;;  %v1468_v50 = vld [vmem:[%s2361_s13 + $0x18] sm:$0xff] }
 0x34f   :  { %1290 = vmatpush.msrb.mxu3 %v186_v62 }
 0x350   :  { %v1697_v51 = vpop.eup %1696 }
 0x351   :  { %v1699_v52 = vpop.eup %1698  ;;  %v1015_v53 = vmul.f32 %v1697_v51, %v1681_v26  ;;  %v1467_v51 = vld [vmem:[%s2361_s13 + $0x10] sm:$0xff] }
 0x352   :  { %v1701_v54 = vpop.eup %1700  ;;  %v1018_v55 = vmul.f32 %v1699_v52, %v1685_v30  ;;  %v1466_v52 = vld [vmem:[%s2361_s13 + $0x8] sm:$0xff] }
 0x353   :  { %v996_v56 = vpop.xlane.xlu1 %995  ;;  %v1012_v57 = vmul.f32 %v1701_v54, %v1683_v28  ;;  %v1712_v28 = vld [vmem:[%s2369_s26] sm:$0xff] }
 0x354   :  { %1702 = vrcp.f32 %v996_v56 }
 0x355   :  { %1629 = vmatmul.msk.f32.vlgmr.msrb.gmra.mxu0 %vm709_vm8, %v1015_v53  ;;  %1626 = vmatmul.msk.f32.vlgmr.msrb.gmra.mxu1 %vm709_vm8, %v1012_v57  ;;  %v1465_v53 = vld [vmem:[%s2361_s13] sm:$0xff]  ;;  %v1535_v57 = vld [vmem:[%s2363_s15 + $0x78] sm:$0xff] }
 0x356   :  { %1632 = vmatmul.msk.f32.vlgmr.msra.gmra.mxu3 %vm709_vm8, %v1018_v55  ;;  %1313 = vmatpush.msrb.mxu0 %v183_v61 }
 0x357   :  { %1382 = vmatpush.msra.mxu3 %v186_v62  ;;  %1244 = vmatpush.msrb.mxu1 %v184_v63  ;;  %v1532_v62 = vld [vmem:[%s2363_s15 + $0x60] sm:$0xff] }
 0x35a   :  { %v1703_v58 = vpop.eup %1702 }
 0x35b   :  { %v1016_v59 = vmul.f32 %v1703_v58, %v1687_v34  ;;  %v1534_v58 = vld [vmem:[%s2363_s15 + $0x70] sm:$0xff] }
 0x35d   :  { %1630 = vmatmul.msk.f32.vlgmr.msra.gmra.mxu1 %vm709_vm8, %v1016_v59  ;;  %v1533_v59 = vld [vmem:[%s2363_s15 + $0x68] sm:$0xff] }
 0x35e   :  { %1336 = vmatpush.msra.mxu1 %v184_v63 }
 0x3c6   :  { %v1085_v0 = vpop.f32.mrf.mxu2 }
 0x3c7   :  { %1635 = vmatmul.msk.f32.vlgmr.msra.gmra.mxu2 %vm709_vm8, %v1085_v0 }
 0x3ca   :  { %v1039_v1 = vpop.f32.mrf.mxu0 }
 0x3cb   :  { %1633 = vmatmul.msk.f32.vlgmr.msra.gmra.mxu0 %vm709_vm8, %v1039_v1 }
 0x3cc   :  { %1491 = vmatpush.msra.mxu0 %v1468_v50 }
 0x3ce   :  { %1492 = vmatpush.msra.mxu0 %v1467_v51 }
 0x3cf   :  { %v1177_v2 = vpop.f32.mrf.mxu2 }
 0x3d0   :  { %1639 = vmatmul.msk.f32.vlgmr.msrb.gmra.mxu2 %vm709_vm8, %v1177_v2  ;;  %1493 = vmatpush.msra.mxu0 %v1466_v52 }
 0x3d1   :  { %v1108_v3 = vpop.f32.mrf.mxu3 }
 0x3d2   :  { %1636 = vmatmul.msk.f32.vlgmr.msrb.gmra.mxu3 %vm709_vm8, %v1108_v3  ;;  %v1131_v4 = vpop.f32.mrf.mxu0  ;;  %v1062_v5 = vpop.f32.mrf.mxu1  ;;  %1494 = vmatpush.msra.mxu0 %v1465_v53 }
 0x3d3   :  { %1637 = vmatmul.msk.f32.vlgmr.msrb.gmra.mxu0 %vm709_vm8, %v1131_v4  ;;  %1634 = vmatmul.msk.f32.vlgmr.msrb.gmra.mxu1 %vm709_vm8, %v1062_v5 }
 0x3d4   :  { %1540 = vmatpush.msrb.mxu1 %v1535_v57 }
 0x3d6   :  { %1541 = vmatpush.msrb.mxu1 %v1534_v58 }
 0x3d8   :  { %1542 = vmatpush.msrb.mxu1 %v1533_v59  ;;  %v1665_v59 = vld [vmem:[%s2364_s16] ss:$0 sm:$0xff]  ;;  %s1743_s16 = smov 8  }
 0x3d9   :  { %v1200_v6 = vpop.f32.mrf.mxu3 }
 0x3da   :  { %1640 = vmatmul.msk.f32.vlgmr.msra.gmra.mxu3 %vm709_vm8, %v1200_v6  ;;  %v1154_v7 = vpop.f32.mrf.mxu1  ;;  %1543 = vmatpush.msrb.mxu1 %v1532_v62 }
 0x3db   :  { %1638 = vmatmul.msk.f32.vlgmr.msra.gmra.mxu1 %vm709_vm8, %v1154_v7 }
 0x448   :  { %v1223_v8 = vpop.f32.mrf.mxu0 }
 0x449   :  { %v1387_v12 = vsel %vm61_vm0, %v1223_v8, 0.0 }
 0x44a   :  { %v1269_v9 = vpop.f32.mrf.mxu2 }
 0x44b   :  { %v1390_v15 = vsel %vm61_vm0, %v1269_v9, 0.0 }
 0x450   :  { %v1246_v11 = vpop.f32.mrf.mxu1  ;;  %v1315_v20 = vpop.f32.mrf.mxu0 }
 0x451   :  { %v1388_v13 = vsel %vm61_vm0, %v1246_v11, 0.0  ;;  %v1394_v25 = vsel %vm61_vm0, %v1315_v20, 0.0 }
 0x452   :  { %v1389_v14 = vadd.f32 %v1388_v13, %v1387_v12  ;;  %v1663_v12 = vld [vmem:[%s2360_s12] ss:$0 sm:$0xff] }
 0x453   :  { %v1361_v23 = vpop.f32.mrf.mxu2 }
 0x454   :  { %v1391_v17 = vadd.f32 %v1390_v15, %v1389_v14  ;;  %v1397_v30 = vsel %vm61_vm0, %v1361_v23, 0.0  ;;  %v1530_v23 = vld [vmem:[%s2363_s15 + $0x50] sm:$0xff] }
 0x455   :  { %v1292_v16 = vpop.f32.mrf.mxu3 }
 0x456   :  { %v1392_v19 = vsel %vm61_vm0, %v1292_v16, 0.0 }
 0x457   :  { %v1393_v21 = vadd.f32 %v1392_v19, %v1391_v17 }
 0x458   :  { %v1338_v24 = vpop.f32.mrf.mxu1 }
 0x459   :  { %v1405_v22 = vadd.f32 %v1661_v18, %v1393_v21  ;;  %v1395_v26 = vsel %vm61_vm0, %v1338_v24, 0.0  ;;  %v1529_v24 = vld [vmem:[%s2363_s15 + $0x48] sm:$0xff] }
 0x45a   :  { %v1396_v27 = vadd.f32 %v1395_v26, %v1394_v25  ;;  %v1528_v25 = vld [vmem:[%s2363_s15 + $0x40] sm:$0xff]  ;;  %v1527_v26 = vld [vmem:[%s2363_s15 + $0x38] sm:$0xff] }
 0x45b   :  { %v1407_v29 = vadd.f32 %v1712_v28, %v1405_v22  ;;  %v1531_v22 = vld [vmem:[%s2363_s15 + $0x58] sm:$0xff]  ;;  %v1525_v28 = vld [vmem:[%s2363_s15 + $0x28] sm:$0xff] }
 0x45c   :  { %v1398_v32 = vadd.f32 %v1397_v30, %v1396_v27  ;;  %1544 = vmatpush.msrb.mxu1 %v1531_v22  ;;  %v1526_v27 = vld [vmem:[%s2363_s15 + $0x30] sm:$0xff]  ;;  %v1523_v30 = vld [vmem:[%s2363_s15 + $0x18] sm:$0xff] }
 0x45d   :  { %v1384_v31 = vpop.f32.mrf.mxu3  ;;  %v2252_v33 = vsel %vm61_vm0, %v1407_v29, 0.0 }
 0x45e   :  { %v1399_v34 = vsel %vm61_vm0, %v1384_v31, 0.0  ;;  %1412 = vadd.xlane.f32.xlu2 %v2252_v33  ;;  %1545 = vmatpush.msrb.mxu1 %v1530_v23  ;;  %v1522_v31 = vld [vmem:[%s2363_s15 + $0x10] sm:$0xff] }
 0x45f   :  { %v1400_v35 = vadd.f32 %v1399_v34, %v1398_v32  ;;  %v1521_v32 = vld [vmem:[%s2363_s15 + $0x8] sm:$0xff]  ;;  %v1520_v34 = vld [vmem:[%s2363_s15] sm:$0xff] }
 0x460   :  { %1546 = vmatpush.msrb.mxu1 %v1529_v24 }
 0x461   :  { %v1406_v36 = vadd.f32 %v1661_v18, %v1400_v35  ;;  %v1664_v35 = vld [vmem:[%s2362_s14] ss:$0 sm:$0xff] }
 0x462   :  { %1547 = vmatpush.msrb.mxu1 %v1528_v25 }
 0x463   :  { %v1408_v38 = vadd.f32 %v1713_v37, %v1406_v36 }
 0x464   :  { %1548 = vmatpush.msrb.mxu1 %v1527_v26 }
 0x465   :  { %v2260_v39 = vsel %vm61_vm0, %v1408_v38, 0.0 }
 0x466   :  { %1415 = vadd.xlane.f32.xlu0 %v2260_v39  ;;  %1549 = vmatpush.msrb.mxu1 %v1526_v27 }
 0x468   :  { %1550 = vmatpush.msrb.mxu1 %v1525_v28 }
 0x4d1   :  { %v1413_v40 = vpop.xlane.xlu2 %1412 }
 0x4d2   :  { %v1417_v41 = vmul.f32 %v1413_v40, %v1842_v10 }
 0x4d4   :  { %v1419_v42 = vsub.f32 %v1407_v29, %v1417_v41  ;;  %v1524_v29 = vld [vmem:[%s2363_s15 + $0x20] sm:$0xff] }
 0x4d5   :  { %1551 = vmatpush.msrb.mxu1 %v1524_v29 }
 0x4d6   :  { %v1421_v43 = vmul.f32 %v1419_v42, %v1419_v42 }
 0x4d7   :  { %1552 = vmatpush.msrb.mxu1 %v1523_v30 }
 0x4d8   :  { %v1423_v44 = vsel %vm61_vm0, %v1421_v43, 0.0 }
 0x4d9   :  { %1424 = vadd.xlane.f32.xlu1 %v1423_v44  ;;  %v1416_v45 = vpop.xlane.xlu0 %1415  ;;  %1553 = vmatpush.msrb.mxu1 %v1522_v31 }
 0x4da   :  { %v1418_v46 = vmul.f32 %v1416_v45, %v1842_v10 }
 0x4db   :  { %1554 = vmatpush.msrb.mxu1 %v1521_v32 }
 0x4dc   :  { %v1420_v47 = vsub.f32 %v1408_v38, %v1418_v46 }
 0x4dd   :  { %1555 = vmatpush.msrb.mxu1 %v1520_v34 }
 0x4de   :  { %v1422_v48 = vmul.f32 %v1420_v47, %v1420_v47 }
 0x4e0   :  { %v1426_v49 = vsel %vm61_vm0, %v1422_v48, 0.0 }
 0x4e1   :  { %1427 = vadd.xlane.f32.xlu2 %v1426_v49 }
 0x54c   :  { %v1425_v54 = vpop.xlane.xlu1 %1424 }
 0x54d   :  { %v1429_v55 = vmul.f32 %v1425_v54, %v1842_v10 }
 0x54f   :  { %v1431_v56 = vadd.f32 1e-05, %v1429_v55 }
 0x551   :  { %1704 = vrsqrt.f32 %v1431_v56  ;;  %vm1439_vm11 = vweird.f32 %v1431_v56 }
 0x554   :  { %v1428_v60 = vpop.xlane.xlu2 %1427 }
 0x555   :  { %v1430_v61 = vmul.f32 %v1428_v60, %v1842_v10  ;;  %v1662_v10 = vld [vmem:[%s2359_s11] ss:$0 sm:$0xff]  ;;  %s1571_s11 = sshll.u32 %s1741_s9, 4  ;;  %s1572_s11 = int_to_ptr.vmem [resolvable:$true] %s1571_s11 }
 0x557   :  { %v1705_v63 = vpop.eup %1704  ;;  %v1432_v0 = vadd.f32 1e-05, %v1430_v61 }
 0x558   :  { %v1434_v1 = vmul.f32 %v1705_v63, %v1431_v56  ;;  %vm1440_vm10 = vweird.f32 %v1705_v63 }
 0x559   :  { %1706 = vrsqrt.f32 %v1432_v0  ;;  %vm1441_vm12 = vmor %vm1439_vm11, %vm1440_vm10  ;;  %vm1449_vm14 = vweird.f32 %v1432_v0 }
 0x55a   :  { %v1435_v2 = vmul.f32 %v1705_v63, %v1434_v1 }
 0x55c   :  { %v1436_v3 = vmul.f32 0.5, %v1435_v2 }
 0x55e   :  { %v1437_v4 = vsub.f32 1.5, %v1436_v3 }
 0x55f   :  { %v1707_v5 = vpop.eup %1706 }
 0x560   :  { %v1438_v6 = vmul.f32 %v1705_v63, %v1437_v4  ;;  %v1444_v7 = vmul.f32 %v1707_v5, %v1432_v0  ;;  %vm1450_vm13 = vweird.f32 %v1707_v5 }
 0x561   :  { %vm1451_vm15 = vmor %vm1449_vm14, %vm1450_vm13 }
 0x562   :  { %v1442_v8 = vsel %vm1441_vm12, %v1705_v63, %v1438_v6  ;;  %v1445_v9 = vmul.f32 %v1707_v5, %v1444_v7 }
 0x563   :  { %v1453_v11 = vmul.f32 %v1442_v8, %v1419_v42 }
 0x564   :  { %v1446_v13 = vmul.f32 0.5, %v1445_v9 }
 0x565   :  { %v1458_v14 = vmul.f32 %v1662_v10, %v1453_v11 }
 0x566   :  { %v1447_v15 = vsub.f32 1.5, %v1446_v13 }
 0x567   :  { %v1463_v16 = vadd.f32 %v1663_v12, %v1458_v14 }
 0x568   :  { %v1448_v17 = vmul.f32 %v1707_v5, %v1447_v15 }
 0x569   :  { %1641 = vmatmul.msk.f32.vlgmr.msra.gmra.mxu0 %vm61_vm0, %v1463_v16 }
 0x56a   :  { %v1452_v18 = vsel %vm1451_vm15, %v1707_v5, %v1448_v17 }
 0x56b   :  { %v1454_v19 = vmul.f32 %v1452_v18, %v1420_v47 }
 0x56d   :  { %v1459_v20 = vmul.f32 %v1662_v10, %v1454_v19 }
 0x56f   :  { %v1464_v21 = vadd.f32 %v1663_v12, %v1459_v20 }
 0x571   :  { %1642 = vmatmul.msk.f32.gmra.mxu0 %vm61_vm0, %v1464_v21 }
 0x5e6   :  { %v1496_v36 = vpop.f32.mrf.mxu0 }
 0x5e7   :  { %v1497_v37 = vadd.f32 %v1664_v35, %v1496_v36 }
 0x5e9   :  { %v1504_v38 = vmul.f32 0.044715, %v1497_v37  ;;  %v1502_v52 = vmul.f32 0.5, %v1497_v37 }
 0x5eb   :  { %v1506_v40 = vmul.f32 %v1504_v38, %v1497_v37 }
 0x5ed   :  { %v1508_v41 = vmul.f32 %v1506_v40, %v1497_v37 }
 0x5ee   :  { %v1499_v42 = vpop.f32.mrf.mxu0 }
 0x5ef   :  { %v1500_v43 = vadd.f32 %v1664_v35, %v1499_v42  ;;  %v1510_v44 = vadd.f32 %v1508_v41, %v1497_v37 }
 0x5f1   :  { %v1512_v45 = vmul.f32 0.7978846, %v1510_v44  ;;  %v1505_v46 = vmul.f32 0.044715, %v1500_v43  ;;  %v1503_v56 = vmul.f32 0.5, %v1500_v43 }
 0x5f3   :  { %1708 = vtanh.f32 %v1512_v45  ;;  %v1507_v47 = vmul.f32 %v1505_v46, %v1500_v43 }
 0x5f5   :  { %v1509_v48 = vmul.f32 %v1507_v47, %v1500_v43 }
 0x5f7   :  { %v1511_v49 = vadd.f32 %v1509_v48, %v1500_v43 }
 0x5f9   :  { %v1709_v50 = vpop.eup %1708  ;;  %v1513_v51 = vmul.f32 0.7978846, %v1511_v49 }
 0x5fa   :  { %v1516_v53 = vadd.f32 1.0, %v1709_v50 }
 0x5fb   :  { %1710 = vtanh.f32 %v1513_v51 }
 0x5fc   :  { %v1518_v54 = vmul.f32 %v1516_v53, %v1502_v52 }
 0x5fe   :  { %1556 = vmatmul.f32.vlgmr.msrb.gmra.mxu1 %v1518_v54 }
 0x601   :  { %v1711_v55 = vpop.eup %1710 }
 0x602   :  { %v1517_v57 = vadd.f32 1.0, %v1711_v55 }
 0x604   :  { %v1519_v58 = vmul.f32 %v1517_v57, %v1503_v56 }
 0x606   :  { %1559 = vmatmul.f32.gmra.mxu1 %v1519_v58 }
 0x67b   :  { %v1557_v60 = vpop.f32.mrf.mxu1 }
 0x67c   :  { %v1558_v61 = vadd.f32 %v1665_v59, %v1557_v60 }
 0x67e   :  { %v1563_v62 = vadd.f32 %v1558_v61, %v2252_v33 }
 0x680   :  { %1565 = vst [vmem:[#allocation2] sm:$0xff] %v1563_v62 }
 0x683   :  { %v1560_v63 = vpop.f32.mrf.mxu1 }
 0x684   :  { %v1561_v0 = vadd.f32 %v1665_v59, %v1560_v63 }
 0x686   :  { %v1564_v1 = vadd.f32 %v1561_v0, %v2260_v39 }
 0x688   :  { %1566 = vst [vmem:[#allocation2 + $0x8] sm:$0xff] %v1564_v1 }
 0x689   :  { %1579 = dma.vmem_to_hbm [thread:$0]  %s1572_s11, 256, %s1574_s18, [#allocation3], %s1742_s19, %s1742_s19, %s1743_s16  }
 0x68a   :  { %1738 = dma.done.wait [#allocation3], 256  }
 0x68b   :  { %1739 = vsyncadd [#allocation3], 4294967040 }
 0x68c   :  { %1584 = vsyncpa [#allocation3], 1 }

</bundles_post_ra>
